<compile_context>
chip_gen: v7x
topology: tpu7x:2x2x1
jax: 0.10.0
libtpu: 0.0.40
codegen_flags: <defaults>
</compile_context>

<pallas_src>
import functools

import jax
import jax.numpy as jnp
from jax.experimental import pallas as pl
from jax.experimental.pallas import tpu as pltpu


def _round_up(x, m):
    return (x + m - 1) // m * m


def _cdiv(a, b):
    return -(-a // b)


def _mwcf_partials_kernel(o_row_ref, o_dense_ref, t_dense_ref, cf_ref,
                          bce_ref, sq_ref, *, n_true, tile_n, steps_per_slice):
    s = pl.program_id(0)          # slice (parallel across TensorCores on v7x)
    i = pl.program_id(1)          # step within the slice (reduction axis)
    g = s * steps_per_slice + i   # global tile index (may be a clamped dummy step)
    base = g * tile_n             # first batch element covered by this tile

    @pl.when(i == 0)
    def _init():
        bce_ref[...] = jnp.zeros_like(bce_ref)
        sq_ref[...] = jnp.zeros_like(sq_ref)

    # ---- BCE partial sum: fully lane+sublane dense (rows, 128) layout --------
    o_d = o_dense_ref[...].astype(jnp.float32)
    t_d = t_dense_ref[...].astype(jnp.float32)
    rows = o_d.shape[0]
    r_idx = jax.lax.broadcasted_iota(jnp.int32, (rows, 128), 0)
    c_idx = jax.lax.broadcasted_iota(jnp.int32, (rows, 128), 1)
    valid_d = (base + r_idx * 128 + c_idx) < n_true
    o_safe = jnp.where(valid_d, o_d, 0.5)            # keep log() finite on pad/garbage
    log_o = jnp.maximum(jnp.log(o_safe), -100.0)     # PyTorch BCELoss log clamp
    log_1mo = jnp.maximum(jnp.log(1.0 - o_safe), -100.0)
    bce_terms = jnp.where(valid_d, -(t_d * log_o + (1.0 - t_d) * log_1mo), 0.0)
    bce_ref[...] += jnp.sum(bce_terms)

    # ---- Frobenius partial sum: cf is (C, TILE_N), output row broadcasts -----
    o_r = o_row_ref[...].astype(jnp.float32)         # (1, TILE_N)
    cf = cf_ref[...].astype(jnp.float32)             # (C, TILE_N)
    lane = base + jax.lax.broadcasted_iota(jnp.int32, (1, tile_n), 1)
    valid_r = lane < n_true                          # (1, TILE_N), broadcasts over C
    diff = o_r - cf
    sq_ref[...] += jnp.sum(jnp.where(valid_r, diff * diff, 0.0))


def _choose_tile_n(n, c, num_slices):
    # Live VMEM per lane-column (bytes), accounting for sublane padding to 8:
    #   cf block      : round_up(C, 8) * 4, double-buffered
    #   output row    : 8 * 4 (one row padded to 8 sublanes), double-buffered
    #   dense out/tgt : 4 each, double-buffered
    c_pad = _round_up(max(c, 1), 8)
    bytes_per_col = 4 * (2 * c_pad + 2 * 8 + 2 * 1 + 2 * 1)
    budget = 20 * 1024 * 1024          # leaves headroom inside the 32 MiB scoped limit
    t = max(1024, (budget // bytes_per_col) // 1024 * 1024)
    per_slice = _cdiv(max(n, 1), max(num_slices, 1))
    return min(t, _round_up(per_slice, 1024))


def mwcf_loss(output, target, counterfactuals_output, lam=1.0, eps=0.01, *,
              tile_n=None, num_slices=2, use_pallas=True):
    """MWCF loss. output/target: (N, 1); counterfactuals_output: (N, C)."""
    n, one = output.shape
    assert one == 1, "output expected as (N, 1)"
    c = counterfactuals_output.shape[1]

    if not use_pallas:
        # Tiny-shape path: fused XLA elementwise+reduce beats kernel dispatch cost.
        return mwcf_loss_reference(output, target, counterfactuals_output, lam, eps)

    if tile_n is None:
        tile_n = _choose_tile_n(n, c, num_slices)
    assert tile_n % 1024 == 0 and tile_n >= 1024

    num_tiles = _cdiv(n, tile_n)
    num_slices = max(1, min(num_slices, num_tiles))
    steps_per_slice = _cdiv(num_tiles, num_slices)
    last_tile = num_tiles - 1

    # ----- layout plumbing ---------------------------------------------------
    # TODO(synk): the counterfactual head should emit (C, N) directly (fold the transpose
    # into its producing matmul); this wrapper transpose is an extra HBM round trip over
    # the largest input that a fused producer would not pay.
    cf_cn = jnp.transpose(counterfactuals_output)            # (C, N), lane-dense
    n_pad = _round_up(n, 1024)                               # tiny: output/target only
    o_flat = output.reshape(-1)
    t_flat = target.reshape(-1)
    if n_pad != n:
        o_flat = jnp.pad(o_flat, (0, n_pad - n))
        t_flat = jnp.pad(t_flat, (0, n_pad - n))
    o_row = o_flat.reshape(1, n_pad)                         # broadcast view vs cf
    o_dense = o_flat.reshape(n_pad // 128, 128)              # dense view for BCE
    t_dense = t_flat.reshape(n_pad // 128, 128)

    def col_map(s, i):      # cf / output-row blocks: (0, global tile), clamped
        return 0, jnp.minimum(s * steps_per_slice + i, last_tile)

    def row_map(s, i):      # dense output/target blocks: (global tile, 0), clamped
        return jnp.minimum(s * steps_per_slice + i, last_tile), 0

    def out_map(s, i):      # one partial-sum block per slice, resident over i
        return s, 0

    kernel = functools.partial(_mwcf_partials_kernel, n_true=n, tile_n=tile_n,
                               steps_per_slice=steps_per_slice)

    itemsize = jnp.dtype(counterfactuals_output.dtype).itemsize
    cost = pl.CostEstimate(
        flops=int(3 * n * c + 8 * n),
        transcendentals=int(2 * n),
        bytes_accessed=int(itemsize * n * c + 3 * 4 * n_pad + 2 * num_slices * 512),
    )

    bce_parts, sq_parts = pl.pallas_call(
        kernel,
        out_shape=(jax.ShapeDtypeStruct((num_slices, 128), jnp.float32),
                   jax.ShapeDtypeStruct((num_slices, 128), jnp.float32)),
        grid_spec=pltpu.PrefetchScalarGridSpec(
            num_scalar_prefetch=0,
            grid=(num_slices, steps_per_slice),
            in_specs=[
                pl.BlockSpec((1, tile_n), col_map),            # output row view
                pl.BlockSpec((tile_n // 128, 128), row_map),   # output, dense view
                pl.BlockSpec((tile_n // 128, 128), row_map),   # target, dense view
                pl.BlockSpec((c, tile_n), col_map),            # counterfactuals (C, N)
            ],
            out_specs=(
                pl.BlockSpec((1, 128), out_map),               # per-slice BCE sum
                pl.BlockSpec((1, 128), out_map),               # per-slice sum of squares
            ),
        ),
        compiler_params=pltpu.CompilerParams(
            dimension_semantics=("parallel", "arbitrary"),
            vmem_limit_bytes=32 * 1024 * 1024,
        ),
        cost_estimate=cost,
    )(o_row, o_dense, t_dense, cf_cn)

    # O(1) epilogue in XLA: lam / eps never reach the kernel -> no recompiles on sweeps.
    bce = jnp.sum(bce_parts[:, 0]) / jnp.float32(n)
    frob = jnp.sqrt(jnp.sum(sq_parts[:, 0]))
    return bce + lam * c * jnp.maximum(frob - eps, 0.0)


def mwcf_loss_reference(output, target, cf, lam=1.0, eps=0.01):
    # Pure-JAX mirror of the PyTorch forward (also the tiny-shape fast path).
    n = output.shape[0]
    c = cf.shape[1]
    o = output.astype(jnp.float32)
    t = target.astype(jnp.float32)
    log_o = jnp.maximum(jnp.log(o), -100.0)
    log_1mo = jnp.maximum(jnp.log(1.0 - o), -100.0)
    bce = jnp.mean(-(t * log_o + (1.0 - t) * log_1mo))
    outputs = jnp.tile(o, (1, c))
    frob = jnp.linalg.norm(outputs - cf.astype(jnp.float32))
    inner = jnp.mean(jnp.maximum(frob - eps, jnp.zeros((n, c), jnp.float32)), axis=0)
    return bce + lam * jnp.sum(inner)


if __name__ == "__main__":
    key = jax.random.PRNGKey(0)
    cases = [
        (8, 4, None),      # tiny, single (very ragged) tile, grid (1, 1)
        (300, 4, None),    # N not a multiple of 128/1024 -> in-kernel masking
        (256, 16, None),   # wider counterfactual set
        (2085, 8, 1024),   # multi-tile: both slices, ragged tail + clamped dummy step
    ]
    for n, c, tn in cases:
        key, k1, k2, k3 = jax.random.split(key, 4)
        # output and counterfactual outputs are probabilities in (0, 1); target is {0, 1}.
        output = jax.nn.sigmoid(jax.random.normal(k1, (n, 1), dtype=jnp.float32))
        target = jax.random.bernoulli(k2, 0.5, (n, 1)).astype(jnp.float32)
        cf = jax.nn.sigmoid(jax.random.normal(k3, (n, c), dtype=jnp.float32))

        loss = mwcf_loss(output, target, cf, lam=1.0, eps=0.01, tile_n=tn)
        loss = jax.block_until_ready(loss)

        ref = mwcf_loss_reference(output, target, cf, lam=1.0, eps=0.01)
        assert jnp.allclose(loss, ref, rtol=1e-5, atol=1e-5), (n, c, float(loss), float(ref))

    print("KERNEL_OK")
</pallas_src>

<mosaic_0001>
module attributes {stable_mosaic.version = 11 : i64} {
  func.func @_mwcf_partials_kernel(%arg0: i32, %arg1: i32, %arg2: memref<1x1024xf32, #tpu.memory_space<vmem>>, %arg3: memref<8x128xf32, #tpu.memory_space<vmem>>, %arg4: memref<8x128xf32, #tpu.memory_space<vmem>>, %arg5: memref<4x1024xf32, #tpu.memory_space<vmem>>, %arg6: memref<1x128xf32, #tpu.memory_space<vmem>>, %arg7: memref<1x128xf32, #tpu.memory_space<vmem>>) attributes {dimension_semantics = [#tpu.dimension_semantics<parallel>, #tpu.dimension_semantics<arbitrary>], iteration_bounds = array<i64: 1, 1>, scalar_prefetch = 0 : i64, scratch_operands = 0 : i64, tpu.core_type = #tpu.core_type<tc>, window_params = [{transform_indices = @transform_0, window_bounds = array<i64: 1, 1024>}, {transform_indices = @transform_1, window_bounds = array<i64: 8, 128>}, {transform_indices = @transform_2, window_bounds = array<i64: 8, 128>}, {transform_indices = @transform_3, window_bounds = array<i64: 4, 1024>}, {transform_indices = @transform_4, window_bounds = array<i64: 1, 128>}, {transform_indices = @transform_5, window_bounds = array<i64: 1, 128>}]} {
    %c1_i32 = arith.constant 1 : i32
    %0 = arith.muli %arg0, %c1_i32 : i32
    %1 = arith.addi %0, %arg1 : i32
    %c1024_i32 = arith.constant 1024 : i32
    %2 = arith.muli %1, %c1024_i32 : i32
    %c0_i32 = arith.constant 0 : i32
    %3 = arith.cmpi eq, %arg1, %c0_i32 : i32
    %4 = arith.extui %3 : i1 to i32
    %c0_i32_0 = arith.constant 0 : i32
    %5 = arith.cmpi ne, %4, %c0_i32_0 : i32
    scf.if %5 {
      %cst_26 = arith.constant 0.000000e+00 : f32
      %66 = vector.broadcast %cst_26 : f32 to vector<1x128xf32>
      %c0_27 = arith.constant 0 : index
      %c0_28 = arith.constant 0 : index
      %67 = vector.load %arg6[%c0_27, %c0_28] : memref<1x128xf32, #tpu.memory_space<vmem>>, vector<1x128xf32>
      tpu.vector_store %arg6[%c0_27, %c0_28], %66 {strides = array<i32>} : memref<1x128xf32, #tpu.memory_space<vmem>>, vector<1x128xf32>,
      %cst_29 = arith.constant 0.000000e+00 : f32
      %68 = vector.broadcast %cst_29 : f32 to vector<1x128xf32>
      %c0_30 = arith.constant 0 : index
      %c0_31 = arith.constant 0 : index
      %69 = vector.load %arg7[%c0_30, %c0_31] : memref<1x128xf32, #tpu.memory_space<vmem>>, vector<1x128xf32>
      tpu.vector_store %arg7[%c0_30, %c0_31], %68 {strides = array<i32>} : memref<1x128xf32, #tpu.memory_space<vmem>>, vector<1x128xf32>,
    } else {
    }
    %c0 = arith.constant 0 : index
    %c0_1 = arith.constant 0 : index
    %6 = vector.load %arg3[%c0, %c0_1] : memref<8x128xf32, #tpu.memory_space<vmem>>, vector<8x128xf32>
    %c0_2 = arith.constant 0 : index
    %c0_3 = arith.constant 0 : index
    %7 = vector.load %arg4[%c0_2, %c0_3] : memref<8x128xf32, #tpu.memory_space<vmem>>, vector<8x128xf32>
    %8 = tpu.iota {dimensions = array<i32: 0>} : vector<8x128xi32>
    %9 = tpu.iota {dimensions = array<i32: 1>} : vector<8x128xi32>
    %c128_i32 = arith.constant 128 : i32
    %10 = vector.broadcast %c128_i32 : i32 to vector<8x128xi32>
    %11 = arith.muli %8, %10 : vector<8x128xi32>
    %12 = vector.broadcast %2 : i32 to vector<8x128xi32>
    %13 = arith.addi %12, %11 : vector<8x128xi32>
    %14 = arith.addi %13, %9 : vector<8x128xi32>
    %c8_i32 = arith.constant 8 : i32
    %15 = vector.broadcast %c8_i32 : i32 to vector<8x128xi32>
    %16 = arith.cmpi slt, %14, %15 : vector<8x128xi32>
    %cst = arith.constant 5.000000e-01 : f32
    %17 = vector.broadcast %cst : f32 to vector<8x128xf32>
    %18 = arith.select %16, %6, %17 : vector<8x128xi1>, vector<8x128xf32>
    %19 = math.log %18 : vector<8x128xf32>
    %cst_4 = arith.constant -1.000000e+02 : f32
    %20 = vector.broadcast %cst_4 : f32 to vector<8x128xf32>
    %21 = arith.maximumf %19, %20 : vector<8x128xf32>
    %cst_5 = arith.constant 1.000000e+00 : f32
    %22 = vector.broadcast %cst_5 : f32 to vector<8x128xf32>
    %23 = arith.subf %22, %18 : vector<8x128xf32>
    %24 = math.log %23 : vector<8x128xf32>
    %cst_6 = arith.constant -1.000000e+02 : f32
    %25 = vector.broadcast %cst_6 : f32 to vector<8x128xf32>
    %26 = arith.maximumf %24, %25 : vector<8x128xf32>
    %27 = arith.mulf %7, %21 : vector<8x128xf32>
    %cst_7 = arith.constant 1.000000e+00 : f32
    %28 = vector.broadcast %cst_7 : f32 to vector<8x128xf32>
    %29 = arith.subf %28, %7 : vector<8x128xf32>
    %30 = arith.mulf %29, %26 : vector<8x128xf32>
    %31 = arith.addf %27, %30 : vector<8x128xf32>
    %cst_8 = arith.constant 0.000000e+00 : f32
    %32 = vector.broadcast %cst_8 : f32 to vector<8x128xf32>
    %33 = arith.subf %32, %31 : vector<8x128xf32>
    %cst_9 = arith.constant 0.000000e+00 : f32
    %34 = vector.broadcast %cst_9 : f32 to vector<8x128xf32>
    %35 = arith.select %16, %33, %34 : vector<8x128xi1>, vector<8x128xf32>
    %c0_10 = arith.constant 0 : index
    %c0_11 = arith.constant 0 : index
    %36 = vector.load %arg6[%c0_10, %c0_11] : memref<1x128xf32, #tpu.memory_space<vmem>>, vector<1x128xf32>
    %37 = vector.shape_cast %35 : vector<8x128xf32> to vector<1x8x128xf32>
    %cst_12 = arith.constant dense<0.000000e+00> : vector<1xf32>
    %38 = vector.multi_reduction <add>, %37, %cst_12 [1, 2] : vector<1x8x128xf32> to vector<1xf32>
    %39 = vector.shape_cast %38 : vector<1xf32> to vector<1x1x1xf32>
    %40 = vector.extract %39[0, 0, 0] : f32 from vector<1x1x1xf32>
    %41 = vector.broadcast %40 : f32 to vector<1x128xf32>
    %42 = arith.addf %36, %41 : vector<1x128xf32>
    %c0_13 = arith.constant 0 : index
    %c0_14 = arith.constant 0 : index
    %43 = vector.load %arg6[%c0_13, %c0_14] : memref<1x128xf32, #tpu.memory_space<vmem>>, vector<1x128xf32>
    tpu.vector_store %arg6[%c0_13, %c0_14], %42 {strides = array<i32>} : memref<1x128xf32, #tpu.memory_space<vmem>>, vector<1x128xf32>,
    %c0_15 = arith.constant 0 : index
    %c0_16 = arith.constant 0 : index
    %44 = vector.load %arg2[%c0_15, %c0_16] : memref<1x1024xf32, #tpu.memory_space<vmem>>, vector<1x1024xf32>
    %c0_17 = arith.constant 0 : index
    %c0_18 = arith.constant 0 : index
    %45 = vector.load %arg5[%c0_17, %c0_18] : memref<4x1024xf32, #tpu.memory_space<vmem>>, vector<4x1024xf32>
    %46 = tpu.iota {dimensions = array<i32: 1>} : vector<1x1024xi32>
    %47 = vector.broadcast %2 : i32 to vector<1x1024xi32>
    %48 = arith.addi %47, %46 : vector<1x1024xi32>
    %c8_i32_19 = arith.constant 8 : i32
    %49 = vector.broadcast %c8_i32_19 : i32 to vector<1x1024xi32>
    %50 = arith.cmpi slt, %48, %49 : vector<1x1024xi32>
    %51 = vector.broadcast %44 : vector<1x1024xf32> to vector<4x1024xf32>
    %52 = arith.subf %51, %45 : vector<4x1024xf32>
    %c0_20 = arith.constant 0 : index
    %c0_21 = arith.constant 0 : index
    %53 = vector.load %arg7[%c0_20, %c0_21] : memref<1x128xf32, #tpu.memory_space<vmem>>, vector<1x128xf32>
    %54 = arith.mulf %52, %52 : vector<4x1024xf32>
    %cst_22 = arith.constant 0.000000e+00 : f32
    %55 = vector.shape_cast %50 : vector<1x1024xi1> to vector<1x1024xi1>
    %56 = vector.broadcast %55 : vector<1x1024xi1> to vector<4x1024xi1>
    %57 = vector.broadcast %cst_22 : f32 to vector<4x1024xf32>
    %58 = arith.select %56, %54, %57 : vector<4x1024xi1>, vector<4x1024xf32>
    %59 = vector.shape_cast %58 : vector<4x1024xf32> to vector<1x4x1024xf32>
    %cst_23 = arith.constant dense<0.000000e+00> : vector<1xf32>
    %60 = vector.multi_reduction <add>, %59, %cst_23 [1, 2] : vector<1x4x1024xf32> to vector<1xf32>
    %61 = vector.shape_cast %60 : vector<1xf32> to vector<1x1x1xf32>
    %62 = vector.extract %61[0, 0, 0] : f32 from vector<1x1x1xf32>
    %63 = vector.broadcast %62 : f32 to vector<1x128xf32>
    %64 = arith.addf %53, %63 : vector<1x128xf32>
    %c0_24 = arith.constant 0 : index
    %c0_25 = arith.constant 0 : index
    %65 = vector.load %arg7[%c0_24, %c0_25] : memref<1x128xf32, #tpu.memory_space<vmem>>, vector<1x128xf32>
    tpu.vector_store %arg7[%c0_24, %c0_25], %64 {strides = array<i32>} : memref<1x128xf32, #tpu.memory_space<vmem>>, vector<1x128xf32>,
    return
  }
  func.func @transform_0(%arg0: i32, %arg1: i32) -> (i32, i32) {
    %c1_i32 = arith.constant 1 : i32
    %0 = arith.muli %arg0, %c1_i32 : i32
    %1 = arith.addi %0, %arg1 : i32
    %c0_i32 = arith.constant 0 : i32
    %2 = arith.minsi %1, %c0_i32 : i32
    %c0_i32_0 = arith.constant 0 : i32
    %c0_i32_1 = arith.constant 0 : i32
    return %c0_i32_0, %2 : i32, i32
  }
  func.func @transform_1(%arg0: i32, %arg1: i32) -> (i32, i32) {
    %c1_i32 = arith.constant 1 : i32
    %0 = arith.muli %arg0, %c1_i32 : i32
    %1 = arith.addi %0, %arg1 : i32
    %c0_i32 = arith.constant 0 : i32
    %2 = arith.minsi %1, %c0_i32 : i32
    %c0_i32_0 = arith.constant 0 : i32
    %c0_i32_1 = arith.constant 0 : i32
    return %2, %c0_i32_0 : i32, i32
  }
  func.func @transform_2(%arg0: i32, %arg1: i32) -> (i32, i32) {
    %c1_i32 = arith.constant 1 : i32
    %0 = arith.muli %arg0, %c1_i32 : i32
    %1 = arith.addi %0, %arg1 : i32
    %c0_i32 = arith.constant 0 : i32
    %2 = arith.minsi %1, %c0_i32 : i32
    %c0_i32_0 = arith.constant 0 : i32
    %c0_i32_1 = arith.constant 0 : i32
    return %2, %c0_i32_0 : i32, i32
  }
  func.func @transform_3(%arg0: i32, %arg1: i32) -> (i32, i32) {
    %c1_i32 = arith.constant 1 : i32
    %0 = arith.muli %arg0, %c1_i32 : i32
    %1 = arith.addi %0, %arg1 : i32
    %c0_i32 = arith.constant 0 : i32
    %2 = arith.minsi %1, %c0_i32 : i32
    %c0_i32_0 = arith.constant 0 : i32
    %c0_i32_1 = arith.constant 0 : i32
    return %c0_i32_0, %2 : i32, i32
  }
  func.func @transform_4(%arg0: i32, %arg1: i32) -> (i32, i32) {
    %c0_i32 = arith.constant 0 : i32
    %c0_i32_0 = arith.constant 0 : i32
    return %arg0, %c0_i32 : i32, i32
  }
  func.func @transform_5(%arg0: i32, %arg1: i32) -> (i32, i32) {
    %c0_i32 = arith.constant 0 : i32
    %c0_i32_0 = arith.constant 0 : i32
    return %arg0, %c0_i32 : i32, i32
  }
}

</mosaic_0001>

<bundles_post_ra>
// kernel: tpu_custom_call.1
= control target key start
LH: loop header
LB: loop body
LE: loop exit
PB: predicated region body
PF: predicated region fallthrough
CT: control target
= control target key end

     0   :  { %11 = vsyncpa [#allocation3], 0  ;;  %s595_s0 = inlined_call_operand.hbm [shape: f32[1,1024], index: 0, kind: input, shape index: {}]   ;;  %s596_s1 = inlined_call_operand.hbm [shape: f32[8,128], index: 1, kind: input, shape index: {}]   ;;  %s597_s2 = inlined_call_operand.hbm [shape: f32[8,128], index: 2, kind: input, shape index: {}]   ;;  %s598_s3 = inlined_call_operand.vmem [shape: f32[4,8], index: 3, kind: input, shape index: {}]   ;;  %s599_s4 = inlined_call_operand.hbm [shape: f32[1,128], index: 4, kind: output, shape index: {0}]   ;;  %s600_s5 = inlined_call_operand.hbm [shape: f32[1,128], index: 5, kind: output, shape index: {1}]  }
   0x1   :  { %12 = vsyncpa [#allocation6], 0 }
   0x2   :  { %13 = vsyncpa [#allocation4], 0 }
   0x3   :  { %14 = vsyncpa [#allocation10], 0  ;;  %s494_s18 = smov [#allocation5]   ;;  %s495_s20 = smov [#allocation2]  }
   0x4   :  { %s42_s19 = sshll.u32 %s494_s18, 4  ;;  %s27_s21 = sshll.u32 %s495_s20, 4  ;;  %s43_s19 = int_to_ptr.vmem [resolvable:$true] %s42_s19  ;;  %s28_s21 = int_to_ptr.vmem [resolvable:$true] %s27_s21 }
   0x5   :  { %s376_s24 = scalar_lea.hbm %s596_s1, 128 }
   0x6   :  { %p377_p0 = scmp.ne.s32.totalorder %s596_s1, %s376_s24  ;;  %p380_p1 = scmp.lt.u32.totalorder %s376_s24, %s596_s1 }
   0x8   :  { %p382_p2 = pnand %p380_p1, %p377_p0 }
   0xa   :  { %385 = shalt.err (!%p382_p2)
}
   0xb   :  { %s386_s29 = scalar_lea.vmem %s43_s19, 128  ;;  %p391_p4 = scmp.lt.s32.totalorder %s43_s19, %s43_s19 }
   0xc   :  { %p387_p3 = scmp.ne.s32.totalorder %s43_s19, %s386_s29  ;;  %p392_p5 = scmp.lt.s32.totalorder %s386_s29, %s386_s29 }
   0xe   :  { %p393_p6 = por %p392_p5, %p391_p4 }
  0x10   :  { %p394_p7 = pnand %p393_p6, %p387_p3 }
  0x12   :  { %397 = shalt.err (!%p394_p7)
}
  0x13   :  { %45 = dma.hbm_to_vmem [thread:$0]  %s596_s1, 128, %s43_s19, [#allocation6]  }
  0x14   :  { %s398_s9 = scalar_lea.hbm %s595_s0, 128 }
  0x15   :  { %p399_p8 = scmp.ne.s32.totalorder %s595_s0, %s398_s9  ;;  %p402_p9 = scmp.lt.u32.totalorder %s398_s9, %s595_s0 }
  0x17   :  { %p404_p10 = pnand %p402_p9, %p399_p8 }
  0x19   :  { %407 = shalt.err (!%p404_p10)
}
  0x1a   :  { %s408_s14 = scalar_lea.vmem %s28_s21, 128  ;;  %p413_p12 = scmp.lt.s32.totalorder %s28_s21, %s28_s21 }
  0x1b   :  { %p409_p11 = scmp.ne.s32.totalorder %s28_s21, %s408_s14  ;;  %p414_p13 = scmp.lt.s32.totalorder %s408_s14, %s408_s14 }
  0x1d   :  { %p415_p0 = por %p414_p13, %p413_p12 }
  0x1f   :  { %p416_p1 = pnand %p415_p0, %p409_p11 }
  0x21   :  { %419 = shalt.err (!%p416_p1)
}
  0x22   :  { %30 = dma.hbm_to_vmem [thread:$0]  %s595_s0, 128, %s28_s21, [#allocation3]  }
  0x23   :  { %s496_s16 = smov [#allocation7]   ;;  %s420_s20 = scalar_lea.hbm %s597_s2, 128 }
  0x24   :  { %s57_s17 = sshll.u32 %s496_s16, 4  ;;  %p421_p2 = scmp.ne.s32.totalorder %s597_s2, %s420_s20  ;;  %s58_s17 = int_to_ptr.vmem [resolvable:$true] %s57_s17 }
  0x25   :  { %p424_p3 = scmp.lt.u32.totalorder %s420_s20, %s597_s2 }
  0x27   :  { %p426_p4 = pnand %p424_p3, %p421_p2 }
  0x29   :  { %429 = shalt.err (!%p426_p4)
}
  0x2a   :  { %s430_s26 = scalar_lea.vmem %s58_s17, 128  ;;  %p435_p6 = scmp.lt.s32.totalorder %s58_s17, %s58_s17 }
  0x2b   :  { %p431_p5 = scmp.ne.s32.totalorder %s58_s17, %s430_s26  ;;  %p436_p7 = scmp.lt.s32.totalorder %s430_s26, %s430_s26 }
  0x2d   :  { %p437_p8 = por %p436_p7, %p435_p6 }
  0x2f   :  { %p438_p9 = pnand %p437_p8, %p431_p5 }
  0x31   :  { %441 = shalt.err (!%p438_p9)
}
  0x32   :  { %60 = dma.hbm_to_vmem [thread:$0]  %s597_s2, 128, %s58_s17, [#allocation6]  }
  0x33   :  { %486 = dma.done.wait [#allocation3], 128  }
  0x34   :  { %487 = vsyncadd [#allocation3], 4294967168 }
  0x35   :  { %488 = dma.done.wait [#allocation6], 256  }
  0x36   :  { %489 = vsyncadd [#allocation6], 4294967040  ;;  %v134_v0 = vlaneseq  ;;  %v132_v5 = vld [vmem:[#allocation5] sm:$0xff]  ;;  %v170_v9 = vld [vmem:[#allocation2] sm:$0xff]  ;;  %vm292_vm2 = vcmask 1043456   ;;  %v497_v29 = vmov 0.0  }
  0x37   :  { %v133_v11 = vld [vmem:[#allocation7] sm:$0xff]  ;;  %v171_v14 = vld [vmem:[%s598_s3] sm:$0xff]  ;;  %130 = vst [vmem:[#allocation8] sm:$0x1] %v497_v29  ;;  %131 = vst [vmem:[#allocation9] sm:$0x1] %v497_v29 }
  0x38   :  { %v135_v1 = vshrl.u32 %v134_v0, 7  ;;  %v137_v2 = vand.u32 127, %v134_v0  ;;  %v152_v18 = vsub.f32 1.0, %v133_v11  ;;  %s498_s3 = smov [#allocation8]   ;;  %s499_s30 = smov [#allocation9]  }
  0x39   :  { %s326_s28 = sshll.u32 %s498_s3, 4  ;;  %s336_s6 = sshll.u32 %s499_s30, 4  ;;  %s327_s28 = int_to_ptr.vmem [resolvable:$true] %s326_s28  ;;  %s337_s6 = int_to_ptr.vmem [resolvable:$true] %s336_s6 }
  0x3a   :  { %v138_v3 = vmul.u32 128, %v135_v1  ;;  %v201_v8 = vsub.s32 0, %v135_v1  ;;  %vm190_vm1 = vcmp.lt.s32.totalorder %v137_v2, 8  ;;  %s442_s8 = scalar_lea.vmem %s327_s28, 16  ;;  %s446_s9 = scalar_lea.vmem %s327_s28, 32 }
  0x3b   :  { %p443_p10 = scmp.ne.s32.totalorder %s327_s28, %s442_s8  ;;  %p447_p11 = scmp.lt.s32.totalorder %s327_s28, %s327_s28 }
  0x3c   :  { %v141_v4 = vadd.s32 %v138_v3, %v137_v2  ;;  %v202_v12 = vrot.slane %v170_v9, %v201_v8  ;;  %p448_p12 = scmp.lt.s32.totalorder %s446_s9, %s442_s8 }
  0x3e   :  { %vm142_vm0 = vcmp.lt.s32.totalorder %v141_v4, 8  ;;  %v251_v19 = vsub.f32 %v202_v12, %v171_v14  ;;  %v157_v44 = vld [vmem:[#allocation8] sm:$0x1]  ;;  %v259_v47 = vld [vmem:[#allocation9] sm:$0x1]  ;;  %p449_p13 = por %p448_p12, %p447_p11 }
  0x3f   :  { %v143_v6 = vsel %vm142_vm0, %v132_v5, 0.5 }
  0x40   :  { %372 = vlog2.f32 %v143_v6  ;;  %v147_v7 = vsub.f32 1.0, %v143_v6  ;;  %v260_v23 = vmul.f32 %v251_v19, %v251_v19  ;;  %p450_p0 = pnand %p449_p13, %p443_p10 }
  0x42   :  { %374 = vlog2.f32 %v147_v7  ;;  %v284_v26 = vsel %vm190_vm1, %v260_v23, 0.0 }
  0x43   :  { %v293_v28 = vsel %vm292_vm2, %v284_v26, 0.0 }
  0x4a   :  { %v373_v10 = vpop.eup %372 }
  0x4b   :  { %v145_v13 = vmul.f32 0.6931472, %v373_v10 }
  0x4c   :  { %v375_v15 = vpop.eup %374 }
  0x4d   :  { %v146_v16 = vmax.f32 %v145_v13, -100.0  ;;  %v149_v17 = vmul.f32 0.6931472, %v375_v15 }
  0x4f   :  { %v150_v20 = vmax.f32 %v149_v17, -100.0  ;;  %v151_v21 = vmul.f32 %v146_v16, %v133_v11 }
  0x51   :  { %v153_v22 = vmul.f32 %v152_v18, %v150_v20 }
  0x53   :  { %v154_v24 = vadd.f32 %v153_v22, %v151_v21 }
  0x55   :  { %v155_v25 = vsub.f32 0.0, %v154_v24 }
  0x57   :  { %v156_v27 = vsel %vm142_vm0, %v155_v25, 0.0 }
  0x58   :  { %158 = vadd.xlane.f32.xlu0 %v156_v27 }
  0x5c   :  { %308 = vadd.xlane.f32.xlu0 %v293_v28 }
  0xe5   :  { %v159_v30 = vpop.xlane.xlu0 %158 }
  0xe6   :  { %v160_v31 = vrot.slane %v159_v30, 4 }
  0xe8   :  { %v161_v32 = vadd.f32 %v160_v31, %v159_v30 }
  0xe9   :  { %v309_v33 = vpop.xlane.xlu0 %308 }
  0xea   :  { %v162_v34 = vrot.slane %v161_v32, 2  ;;  %v310_v35 = vrot.slane %v309_v33, 4 }
  0xec   :  { %v311_v36 = vadd.f32 %v310_v35, %v309_v33  ;;  %v163_v37 = vadd.f32 %v162_v34, %v161_v32 }
  0xee   :  { %v312_v38 = vrot.slane %v311_v36, 2  ;;  %v164_v39 = vrot.slane %v163_v37, 1 }
  0xf0   :  { %v313_v40 = vadd.f32 %v312_v38, %v311_v36  ;;  %v165_v41 = vadd.f32 %v164_v39, %v163_v37 }
  0xf2   :  { %362 = vpush %v165_v41  ;;  %v314_v42 = vrot.slane %v313_v40, 1 }
  0xf4   :  { %v315_v43 = vadd.f32 %v314_v42, %v313_v40 }
  0xf6   :  { %364 = vpush %v315_v43 }
 0x123   :  { %s363_s29 = spop %362 }
 0x124   :  { %v167_v45 = vstv %s363_s29 }
 0x125   :  { %v168_v46 = vadd.f32 %v167_v45, %v157_v44 }
 0x127   :  { %169 = vst [vmem:[#allocation8] sm:$0x1] %v168_v46  ;;  %s365_s7 = spop %364 }
 0x128   :  { %v317_v48 = vstv %s365_s7 }
 0x129   :  { %453 = shalt.err (!%p450_p0)
}
 0x12a   :  { %s454_s12 = scalar_lea.hbm %s599_s4, 16 }
 0x12b   :  { %p455_p1 = scmp.ne.s32.totalorder %s599_s4, %s454_s12  ;;  %p458_p2 = scmp.lt.u32.totalorder %s454_s12, %s599_s4 }
 0x12d   :  { %p460_p3 = pnand %p458_p2, %p455_p1 }
 0x12f   :  { %463 = shalt.err (!%p460_p3)
}
 0x130   :  { %329 = dma.vmem_to_hbm [thread:$0]  %s327_s28, 16, %s599_s4, [#allocation4]   ;;  %v318_v49 = vadd.f32 %v317_v48, %v259_v47 }
 0x131   :  { %s464_s18 = scalar_lea.vmem %s337_s6, 16  ;;  %s468_s19 = scalar_lea.vmem %s337_s6, 32 }
 0x132   :  { %319 = vst [vmem:[#allocation9] sm:$0x1] %v318_v49  ;;  %p465_p4 = scmp.ne.s32.totalorder %s337_s6, %s464_s18  ;;  %p469_p5 = scmp.lt.s32.totalorder %s337_s6, %s337_s6 }
 0x133   :  { %p470_p6 = scmp.lt.s32.totalorder %s468_s19, %s464_s18 }
 0x135   :  { %p471_p7 = por %p470_p6, %p469_p5 }
 0x137   :  { %p472_p8 = pnand %p471_p7, %p465_p4 }
 0x139   :  { %475 = shalt.err (!%p472_p8)
}
 0x13a   :  { %s476_s23 = scalar_lea.hbm %s600_s5, 16 }
 0x13b   :  { %p477_p9 = scmp.ne.s32.totalorder %s600_s5, %s476_s23  ;;  %p480_p10 = scmp.lt.u32.totalorder %s476_s23, %s600_s5 }
 0x13d   :  { %p482_p11 = pnand %p480_p10, %p477_p9 }
 0x13f   :  { %485 = shalt.err (!%p482_p11)
}
 0x140   :  { %339 = dma.vmem_to_hbm [thread:$0]  %s337_s6, 16, %s600_s5, [#allocation10]  }
 0x141   :  { %490 = dma.done.wait [#allocation4], 16  }
 0x142   :  { %491 = vsyncadd [#allocation4], 4294967280 }
 0x143   :  { %492 = dma.done.wait [#allocation10], 16  }
 0x144   :  { %493 = vsyncadd [#allocation10], 4294967280 }
 0x145   :  { %346 = vsyncpa [#allocation3], 1 }
 0x146   :  { %347 = vsyncpa [#allocation6], 1 }
 0x147   :  { %348 = vsyncpa [#allocation4], 1 }
 0x148   :  { %349 = vsyncpa [#allocation10], 1 }

</bundles_post_ra>
